<compile_context>
chip_gen: v5e
topology: v5e:2x2
jax: 0.10.0
libtpu: 0.0.40
codegen_flags: <defaults>
</compile_context>

<pallas_src>
import functools

import jax
import jax.numpy as jnp
from jax.experimental import pallas as pl
from jax.experimental.pallas import tpu as pltpu

EPS = 1e-5
LANE = 128

_CPARAMS = pltpu.CompilerParams(
    dimension_semantics=("parallel",),
    vmem_limit_bytes=48 * 1024 * 1024,
)


def _round_up(x, m):
    return (x + m - 1) // m * m


def _row_tile(rows, target=512):
    """Largest multiple-of-8 divisor of `rows` that is <= target (else rows)."""
    if rows <= target:
        return rows
    t = (target // 8) * 8
    while t >= 8:
        if rows % t == 0:
            return t
        t -= 8
    return rows


# ----------------------------- Pallas kernels ------------------------------ #

def stage1_stats_kernel(x_ref, w1_ref, stats_ref):
    """Per-image sum / sum-of-squares of the conv1 (1x1) output."""
    h = jnp.dot(x_ref[0], w1_ref[...], preferred_element_type=jnp.float32)
    s1 = jnp.sum(h, axis=0, keepdims=True)            # (1, Pp)
    s2 = jnp.sum(h * h, axis=0, keepdims=True)        # (1, Pp)
    stats_ref[:, 0:1, :] = s1[None]
    stats_ref[:, 1:2, :] = s2[None]


def stage12_kernel(x_ref, w1_ref, sc1_ref, sh1_ref, w2_ref, mask_ref,
                   h2_ref, stats_ref, pbuf_ref, *, W):
    """conv1 + folded IBN affine + ReLU, then 3x3 conv as 9 shifted matmuls.

    Also emits per-image sum / sum-of-squares of the conv2 output (for the
    stage-2 batch norm). One image (HW rows) per grid step.
    """
    HW = x_ref.shape[1]
    Pp = w1_ref.shape[1]
    pad = W + 1                                        # leading/trailing pad rows
    cdt = pbuf_ref.dtype

    # --- stage 1: 1x1 conv + per-image affine (IN/BN already folded) + ReLU ---
    h1 = jnp.dot(x_ref[0], w1_ref[...], preferred_element_type=jnp.float32)
    h1 = jnp.maximum(sc1_ref[0] * h1 + sh1_ref[0], 0.0)

    # --- write h1 into the zero-padded flat row buffer ---
    zeros_pad = jnp.zeros((pad, Pp), cdt)
    pbuf_ref[pl.ds(0, pad), :] = zeros_pad
    pbuf_ref[pl.ds(pad + HW, pad), :] = zeros_pad
    pbuf_ref[pl.ds(pad, HW), :] = h1.astype(cdt)

    m_left = mask_ref[:, 0:1]                          # zero where w == 0
    m_right = mask_ref[:, 1:2]                         # zero where w == W - 1

    # --- stage 2: 3x3 conv (stride 1, pad 1) as 9 shifted, masked matmuls ---
    acc = jnp.zeros((HW, Pp), jnp.float32)
    tap = 0
    for dh in (-1, 0, 1):
        for dw in (-1, 0, 1):
            start = pad + dh * W + dw                  # static, always >= 0
            rows = pbuf_ref[pl.ds(start, HW), :]
            if dw == -1:
                rows = rows * m_left
            elif dw == 1:
                rows = rows * m_right
            acc = acc + jnp.dot(rows, w2_ref[tap],
                                preferred_element_type=jnp.float32)
            tap += 1

    s1 = jnp.sum(acc, axis=0, keepdims=True)
    s2 = jnp.sum(acc * acc, axis=0, keepdims=True)
    stats_ref[:, 0:1, :] = s1[None]
    stats_ref[:, 1:2, :] = s2[None]
    h2_ref[...] = acc[None].astype(h2_ref.dtype)


def stage3_stats_kernel(h2_ref, w3_ref, sc2_ref, sh2_ref, stats_ref):
    """Per-row-tile sum / sum-of-squares of conv3(relu(bn2(h2)))."""
    h2 = h2_ref[...].astype(jnp.float32)
    h2n = jnp.maximum(sc2_ref[...] * h2 + sh2_ref[...], 0.0)
    h3 = jnp.dot(h2n.astype(w3_ref.dtype), w3_ref[...],
                 preferred_element_type=jnp.float32)
    s1 = jnp.sum(h3, axis=0, keepdims=True)
    s2 = jnp.sum(h3 * h3, axis=0, keepdims=True)
    stats_ref[:, 0:1, :] = s1[None]
    stats_ref[:, 1:2, :] = s2[None]


def stage3_out_kernel(h2_ref, res_ref, w3_ref, sc2_ref, sh2_ref,
                      sc3_ref, sh3_ref, o_ref):
    """bn2 -> ReLU -> conv3 (1x1) -> bn3 -> +residual -> ReLU."""
    h2 = h2_ref[...].astype(jnp.float32)
    h2n = jnp.maximum(sc2_ref[...] * h2 + sh2_ref[...], 0.0)
    h3 = jnp.dot(h2n.astype(w3_ref.dtype), w3_ref[...],
                 preferred_element_type=jnp.float32)
    y = sc3_ref[...] * h3 + sh3_ref[...] + res_ref[...]
    o_ref[...] = jnp.maximum(y, 0.0)


# ------------------------------ JAX wrapper -------------------------------- #

def _bn_affine(sum_, sumsq, count, gamma, beta):
    mean = sum_ / count
    var = jnp.maximum(sumsq / count - mean * mean, 0.0)
    scale = gamma * jax.lax.rsqrt(var + EPS)
    shift = beta - scale * mean
    return scale, shift


def bottleneck_forward(x, params, planes, compute_dtype=jnp.bfloat16):
    """x: (N, Cin, H, W) float32 (NCHW, PyTorch convention). Returns NCHW f32."""
    N, Cin, H, W = x.shape
    P = planes
    Cout = 4 * P
    assert Cin == Cout, "no downsample branch -> inplanes must equal planes*4"
    # TODO(synk): downsample / stride>1 variants of Bottleneck are not implemented.
    half = P // 2
    HW = H * W
    R = N * HW

    Cinp = _round_up(Cin, LANE)
    Pp = _round_up(P, LANE)
    Coutp = _round_up(Cout, LANE)   # == Cinp (no-downsample residual)
    cdt = compute_dtype

    # ---- layout: NCHW -> rows=(N*H*W), channels last, zero-padded to 128 ----
    x_rows = jnp.transpose(x, (0, 2, 3, 1)).reshape(N, HW, Cin)
    x_pad = jnp.pad(x_rows, ((0, 0), (0, 0), (0, Cinp - Cin)))
    x_cd = x_pad.astype(cdt)                                   # matmul operand
    res_f32 = x_pad.reshape(R, Cinp).astype(jnp.float32)       # residual branch

    # ---- weights / norm params: hoisted, padded, lane-dense ----
    w1 = params["conv1_w"].reshape(P, Cin).T
    w1 = jnp.pad(w1, ((0, Cinp - Cin), (0, Pp - P))).astype(cdt)
    w2 = jnp.transpose(params["conv2_w"], (2, 3, 1, 0)).reshape(9, P, P)
    w2 = jnp.pad(w2, ((0, 0), (0, Pp - P), (0, Pp - P))).astype(cdt)
    w3 = params["conv3_w"].reshape(Cout, P).T
    w3 = jnp.pad(w3, ((0, Pp - P), (0, Coutp - Cout))).astype(cdt)

    gamma1 = jnp.pad(jnp.concatenate([params["in_gamma"], params["bn1_gamma"]]),
                     (0, Pp - P)).astype(jnp.float32)
    beta1 = jnp.pad(jnp.concatenate([params["in_beta"], params["bn1_beta"]]),
                    (0, Pp - P)).astype(jnp.float32)
    gamma2 = jnp.pad(params["bn2_gamma"], (0, Pp - P)).astype(jnp.float32)
    beta2 = jnp.pad(params["bn2_beta"], (0, Pp - P)).astype(jnp.float32)
    gamma3 = jnp.pad(params["bn3_gamma"], (0, Coutp - Cout)).astype(jnp.float32)
    beta3 = jnp.pad(params["bn3_beta"], (0, Coutp - Cout)).astype(jnp.float32)

    # left/right edge masks for the in-kernel 3x3 conv (hoisted out of kernels)
    col = jnp.arange(HW, dtype=jnp.int32) % W
    edge_mask = jnp.stack([col != 0, col != W - 1], axis=1).astype(cdt)  # (HW, 2)

    # ---------------- pass A: stage-1 statistics (grid over images) ----------
    stats1 = pl.pallas_call(
        stage1_stats_kernel,
        out_shape=jax.ShapeDtypeStruct((N, 2, Pp), jnp.float32),
        grid=(N,),
        in_specs=[
            pl.BlockSpec((1, HW, Cinp), lambda n: (n, 0, 0)),
            pl.BlockSpec((Cinp, Pp), lambda n: (0, 0)),
        ],
        out_specs=pl.BlockSpec((1, 2, Pp), lambda n: (n, 0, 0)),
        compiler_params=_CPARAMS,
    )(x_cd, w1)

    # IBN: instance-norm on channels [0, half), batch-norm on [half, P)
    s_im, q_im = stats1[:, 0, :], stats1[:, 1, :]              # (N, Pp)
    in_mean = s_im / HW
    in_var = jnp.maximum(q_im / HW - in_mean * in_mean, 0.0)
    bn_mean = jnp.sum(s_im, axis=0) / R
    bn_var = jnp.maximum(jnp.sum(q_im, axis=0) / R - bn_mean * bn_mean, 0.0)
    is_in = (jnp.arange(Pp) < half)[None, :]
    mean1 = jnp.where(is_in, in_mean, bn_mean[None, :])
    var1 = jnp.where(is_in, in_var, bn_var[None, :])
    scale1 = gamma1[None, :] * jax.lax.rsqrt(var1 + EPS)       # (N, Pp)
    shift1 = beta1[None, :] - scale1 * mean1
    scale1 = scale1.reshape(N, 1, Pp).astype(jnp.float32)
    shift1 = shift1.reshape(N, 1, Pp).astype(jnp.float32)

    # ------- pass B: conv1+IBN+ReLU fused with 3x3 conv; stage-2 stats -------
    pbuf_rows = HW + 2 * (W + 1)
    h2, stats2 = pl.pallas_call(
        functools.partial(stage12_kernel, W=W),
        out_shape=(
            jax.ShapeDtypeStruct((N, HW, Pp), cdt),
            jax.ShapeDtypeStruct((N, 2, Pp), jnp.float32),
        ),
        grid=(N,),
        in_specs=[
            pl.BlockSpec((1, HW, Cinp), lambda n: (n, 0, 0)),
            pl.BlockSpec((Cinp, Pp), lambda n: (0, 0)),
            pl.BlockSpec((1, 1, Pp), lambda n: (n, 0, 0)),
            pl.BlockSpec((1, 1, Pp), lambda n: (n, 0, 0)),
            pl.BlockSpec((9, Pp, Pp), lambda n: (0, 0, 0)),
            pl.BlockSpec((HW, 2), lambda n: (0, 0)),
        ],
        out_specs=(
            pl.BlockSpec((1, HW, Pp), lambda n: (n, 0, 0)),
            pl.BlockSpec((1, 2, Pp), lambda n: (n, 0, 0)),
        ),
        scratch_shapes=[pltpu.VMEM((pbuf_rows, Pp), cdt)],
        compiler_params=_CPARAMS,
    )(x_cd, w1, scale1, shift1, w2, edge_mask)

    sc2, sh2 = _bn_affine(jnp.sum(stats2[:, 0, :], axis=0),
                          jnp.sum(stats2[:, 1, :], axis=0), R, gamma2, beta2)
    scale2 = sc2[None, :].astype(jnp.float32)
    shift2 = sh2[None, :].astype(jnp.float32)

    # ---------- pass C: stage-3 statistics (grid over row tiles) -------------
    h2_flat = h2.reshape(R, Pp)
    TR = _row_tile(R)
    T = R // TR

    stats3 = pl.pallas_call(
        stage3_stats_kernel,
        out_shape=jax.ShapeDtypeStruct((T, 2, Coutp), jnp.float32),
        grid=(T,),
        in_specs=[
            pl.BlockSpec((TR, Pp), lambda t: (t, 0)),
            pl.BlockSpec((Pp, Coutp), lambda t: (0, 0)),
            pl.BlockSpec((1, Pp), lambda t: (0, 0)),
            pl.BlockSpec((1, Pp), lambda t: (0, 0)),
        ],
        out_specs=pl.BlockSpec((1, 2, Coutp), lambda t: (t, 0, 0)),
        compiler_params=_CPARAMS,
    )(h2_flat, w3, scale2, shift2)

    sc3, sh3 = _bn_affine(jnp.sum(stats3[:, 0, :], axis=0),
                          jnp.sum(stats3[:, 1, :], axis=0), R, gamma3, beta3)
    scale3 = sc3[None, :].astype(jnp.float32)
    shift3 = sh3[None, :].astype(jnp.float32)

    # ---------- pass D: bn2 -> relu -> conv3 -> bn3 -> +residual -> relu -----
    out_flat = pl.pallas_call(
        stage3_out_kernel,
        out_shape=jax.ShapeDtypeStruct((R, Coutp), jnp.float32),
        grid=(T,),
        in_specs=[
            pl.BlockSpec((TR, Pp), lambda t: (t, 0)),
            pl.BlockSpec((TR, Coutp), lambda t: (t, 0)),
            pl.BlockSpec((Pp, Coutp), lambda t: (0, 0)),
            pl.BlockSpec((1, Pp), lambda t: (0, 0)),
            pl.BlockSpec((1, Pp), lambda t: (0, 0)),
            pl.BlockSpec((1, Coutp), lambda t: (0, 0)),
            pl.BlockSpec((1, Coutp), lambda t: (0, 0)),
        ],
        out_specs=pl.BlockSpec((TR, Coutp), lambda t: (t, 0)),
        compiler_params=_CPARAMS,
    )(h2_flat, res_f32, w3, scale2, shift2, scale3, shift3)

    out = out_flat[:, :Cout].reshape(N, H, W, Cout)
    return jnp.transpose(out, (0, 3, 1, 2))


# --------------------------- pure-JAX reference ----------------------------- #

def bottleneck_reference(x, params, planes):
    P = planes
    half = P // 2

    def bn(h, gamma, beta):
        m = jnp.mean(h, axis=(0, 2, 3), keepdims=True)
        v = jnp.mean((h - m) ** 2, axis=(0, 2, 3), keepdims=True)
        return gamma[None, :, None, None] * (h - m) / jnp.sqrt(v + EPS) + beta[None, :, None, None]

    def inorm(h, gamma, beta):
        m = jnp.mean(h, axis=(2, 3), keepdims=True)
        v = jnp.mean((h - m) ** 2, axis=(2, 3), keepdims=True)
        return gamma[None, :, None, None] * (h - m) / jnp.sqrt(v + EPS) + beta[None, :, None, None]

    def conv(h, w, pad):
        return jax.lax.conv_general_dilated(h, w, (1, 1), pad)

    out = conv(x, params["conv1_w"], "VALID")
    out = jnp.concatenate(
        [inorm(out[:, :half], params["in_gamma"], params["in_beta"]),
         bn(out[:, half:], params["bn1_gamma"], params["bn1_beta"])], axis=1)
    out = jax.nn.relu(out)
    out = conv(out, params["conv2_w"], "SAME")
    out = jax.nn.relu(bn(out, params["bn2_gamma"], params["bn2_beta"]))
    out = conv(out, params["conv3_w"], "VALID")
    out = bn(out, params["bn3_gamma"], params["bn3_beta"])
    return jax.nn.relu(out + x)


# --------------------------------- main ------------------------------------ #

if __name__ == "__main__":
    N, H, W = 2, 16, 16
    planes = 4
    inplanes = planes * 4  # 16; residual path has no downsample

    key = jax.random.PRNGKey(0)
    ks = jax.random.split(key, 12)

    params = {
        "conv1_w": 0.2 * jax.random.normal(ks[0], (planes, inplanes, 1, 1), jnp.float32),
        "in_gamma": 1.0 + 0.1 * jax.random.normal(ks[1], (planes // 2,), jnp.float32),
        "in_beta": 0.1 * jax.random.normal(ks[2], (planes // 2,), jnp.float32),
        "bn1_gamma": 1.0 + 0.1 * jax.random.normal(ks[3], (planes - planes // 2,), jnp.float32),
        "bn1_beta": 0.1 * jax.random.normal(ks[4], (planes - planes // 2,), jnp.float32),
        "conv2_w": 0.2 * jax.random.normal(ks[5], (planes, planes, 3, 3), jnp.float32),
        "bn2_gamma": 1.0 + 0.1 * jax.random.normal(ks[6], (planes,), jnp.float32),
        "bn2_beta": 0.1 * jax.random.normal(ks[7], (planes,), jnp.float32),
        "conv3_w": 0.2 * jax.random.normal(ks[8], (planes * 4, planes, 1, 1), jnp.float32),
        "bn3_gamma": 1.0 + 0.1 * jax.random.normal(ks[9], (planes * 4,), jnp.float32),
        "bn3_beta": 0.1 * jax.random.normal(ks[10], (planes * 4,), jnp.float32),
    }
    x = jax.random.normal(ks[11], (N, inplanes, H, W), jnp.float32)

    ref = jax.block_until_ready(bottleneck_reference(x, params, planes))

    # f32 compute path: tight correctness check against the f32 reference.
    out_f32 = jax.block_until_ready(
        bottleneck_forward(x, params, planes, compute_dtype=jnp.float32))
    assert out_f32.shape == (N, inplanes, H, W)
    err_f32 = float(jnp.max(jnp.abs(out_f32 - ref)))
    assert err_f32 < 1e-2, err_f32

    # bf16 matmul path (default, halves activation HBM traffic): looser check,
    # since the reference is full f32.
    out_bf16 = jax.block_until_ready(
        bottleneck_forward(x, params, planes, compute_dtype=jnp.bfloat16))
    assert out_bf16.shape == (N, inplanes, H, W)
    err_bf16 = float(jnp.max(jnp.abs(out_bf16 - ref)))
    assert err_bf16 < 2e-1, err_bf16

    print("KERNEL_OK")
</pallas_src>

<mosaic_0001>
module attributes {stable_mosaic.version = 11 : i64} {
  func.func @stage1_stats_kernel(%arg0: i32, %arg1: memref<1x256x128xf32, #tpu.memory_space<vmem>>, %arg2: memref<128x128xf32, #tpu.memory_space<vmem>>, %arg3: memref<1x2x128xf32, #tpu.memory_space<vmem>>) attributes {dimension_semantics = [#tpu.dimension_semantics<parallel>], iteration_bounds = array<i64: 2>, scalar_prefetch = 0 : i64, scratch_operands = 0 : i64, tpu.core_type = #tpu.core_type<tc>, window_params = [{transform_indices = @transform_0, window_bounds = array<i64: 1, 256, 128>}, {pipeline_mode = #tpu.pipeline_mode<synchronous>, transform_indices = @transform_1, window_bounds = array<i64: 128, 128>}, {transform_indices = @transform_2, window_bounds = array<i64: 1, 2, 128>}]} {
    %c0 = arith.constant 0 : index
    %c0_0 = arith.constant 0 : index
    %c0_1 = arith.constant 0 : index
    %0 = vector.load %arg1[%c0, %c0_0, %c0_1] : memref<1x256x128xf32, #tpu.memory_space<vmem>>, vector<1x256x128xf32>
    %1 = vector.shape_cast %0 : vector<1x256x128xf32> to vector<256x128xf32>
    %c0_2 = arith.constant 0 : index
    %c0_3 = arith.constant 0 : index
    %2 = vector.load %arg2[%c0_2, %c0_3] : memref<128x128xf32, #tpu.memory_space<vmem>>, vector<128x128xf32>
    %cst = arith.constant dense<0.000000e+00> : vector<256x128xf32>
    %3 = tpu.matmul %1, %2, %cst {dimension_numbers = #tpu.dot_dimension_numbers<[1], [0], [0], [1], [0, 0, 1, 1], [], []>} : vector<256x128xf32>, vector<128x128xf32>, vector<256x128xf32> -> vector<256x128xf32>
    %cst_4 = arith.constant dense<0.000000e+00> : vector<128xf32>
    %4 = vector.multi_reduction <add>, %3, %cst_4 [0] : vector<256x128xf32> to vector<128xf32>
    %5 = vector.shape_cast %4 : vector<128xf32> to vector<1x128xf32>
    %6 = arith.mulf %3, %3 : vector<256x128xf32>
    %cst_5 = arith.constant dense<0.000000e+00> : vector<128xf32>
    %7 = vector.multi_reduction <add>, %6, %cst_5 [0] : vector<256x128xf32> to vector<128xf32>
    %8 = vector.shape_cast %7 : vector<128xf32> to vector<1x128xf32>
    %9 = vector.shape_cast %5 : vector<1x128xf32> to vector<1x1x128xf32>
    %c0_6 = arith.constant 0 : index
    %c0_7 = arith.constant 0 : index
    %c0_8 = arith.constant 0 : index
    %10 = vector.load %arg3[%c0_6, %c0_7, %c0_8] : memref<1x2x128xf32, #tpu.memory_space<vmem>>, vector<1x1x128xf32>
    tpu.vector_store %arg3[%c0_6, %c0_7, %c0_8], %9 {strides = array<i32>} : memref<1x2x128xf32, #tpu.memory_space<vmem>>, vector<1x1x128xf32>,
    %11 = vector.shape_cast %8 : vector<1x128xf32> to vector<1x1x128xf32>
    %c0_9 = arith.constant 0 : index
    %c1 = arith.constant 1 : index
    %c0_10 = arith.constant 0 : index
    %12 = vector.load %arg3[%c0_9, %c1, %c0_10] : memref<1x2x128xf32, #tpu.memory_space<vmem>>, vector<1x1x128xf32>
    tpu.vector_store %arg3[%c0_9, %c1, %c0_10], %11 {strides = array<i32>} : memref<1x2x128xf32, #tpu.memory_space<vmem>>, vector<1x1x128xf32>,
    return
  }
  func.func @transform_0(%arg0: i32) -> (i32, i32, i32) {
    %c0_i32 = arith.constant 0 : i32
    %c0_i32_0 = arith.constant 0 : i32
    %c0_i32_1 = arith.constant 0 : i32
    return %arg0, %c0_i32, %c0_i32_0 : i32, i32, i32
  }
  func.func @transform_1(%arg0: i32) -> (i32, i32) {
    %c0_i32 = arith.constant 0 : i32
    %c0_i32_0 = arith.constant 0 : i32
    %c0_i32_1 = arith.constant 0 : i32
    return %c0_i32, %c0_i32_0 : i32, i32
  }
  func.func @transform_2(%arg0: i32) -> (i32, i32, i32) {
    %c0_i32 = arith.constant 0 : i32
    %c0_i32_0 = arith.constant 0 : i32
    %c0_i32_1 = arith.constant 0 : i32
    return %arg0, %c0_i32, %c0_i32_0 : i32, i32, i32
  }
}

</mosaic_0001>

<bundles_post_ra>
// kernel: tpu_custom_call.1
= control target key start
LH: loop header
LB: loop body
LE: loop exit
PB: predicated region body
PF: predicated region fallthrough
CT: control target
= control target key end

     0   :  { %7 = vsyncpa [#allocation3], 0  ;;  %s1038_s0 = inlined_call_operand.hbm [shape: f32[2,256,128], index: 0, kind: input, shape index: {}]   ;;  %s1039_s1 = inlined_call_operand.hbm [shape: f32[128,128], index: 1, kind: input, shape index: {}]   ;;  %s1040_s2 = inlined_call_operand.hbm [shape: f32[2,2,128], index: 2, kind: output, shape index: {}]  }
   0x1   :  { %9 = vsyncpa [#allocation3 + $0x1], 0 }
   0x2   :  { %10 = vsyncpa [#allocation6], 0 }
   0x3   :  { %11 = vsyncpa [#allocation4], 0 }
   0x4   :  { %13 = vsyncpa [#allocation4 + $0x1], 0  ;;  %s819_s9 = smov 0   ;;  %s821_s10 = smov 0  }
   0x5   :  { %s823_s11 = smov 0   ;;  %s825_s12 = smov 0  }
   0x6 LB: > { %s840_s13 = sadd.s32 4294967295, %s799_s12   ;;  %s546_s14 = sadd.s32 4294967294, %s799_s12   ;;  %s799_s12 = sphi %s825_s12, %s1050_s12   ;;  %s795_s11 = sphi %s823_s11, %s1049_s11   ;;  %s791_s10 = sphi %s821_s10, %s1048_s10   ;;  %s787_s9 = sphi %s819_s9, %s1047_s9  }
   0x7   : > { %p39_p0 = scmp.ne.s32.totalorder %s791_s10, %s787_s9  ;;  %p40_p1 = scmp.eq.s32.totalorder %s840_s13, 0 }
   0x8   : > { %p84_p2 = scmp.eq.s32.totalorder %s840_s13, 1  ;;  %p90_p3 = scmp.eq.s32.totalorder %s546_s14, 1 }
   0x9   : > { %p849_p4 = por %p40_p1, %p39_p0  ;;  %p547_p5 = scmp.ge.s32.totalorder %s799_s12, 1 }
   0xa   : > { %p854_p6 = por %p90_p3, %p39_p0  ;;  %p97_p7 = scmp.lt.s32.totalorder %s799_s12, 3 }
   0xb   : > { %s108_s19 = sshll.u32 %s1039_s1, 4  ;;  %s801_s21 = smov [#allocation5]   ;;  %s109_s19 = int_to_ptr.hbm [resolvable:$true] %s108_s19 }
   0xc   : > { %p862_p8 = pnand %p547_p5, %p97_p7  ;;  %s110_s22 = sshll.u32 %s801_s21, 4  ;;  %s111_s22 = int_to_ptr.vmem [resolvable:$true] %s110_s22 }
   0xd   : > { %s872_s23 = sadd.s32 1, %s799_s12   ;;  %s802_s24 = smov 128  }
   0xe   : > { %p618_p9 = pneg %p862_p8  ;;  %s803_s25 = smov 8  }
   0xf   : > { %s23_s26 = ssub.s32 %s799_s12, %s872_s23  ;;  %s26_s27 = sadd.s32 1, %s795_s11 }
  0x10   : > { %p619_p10 = pnand %p618_p9, %p40_p1  ;;  %p24_p12 = scmp.eq.s32.totalorder %s23_s26, 0 }
  0x11   : > { %p33_p13 = scmp.ne.s32.totalorder %s795_s11, %s791_s10  ;;  %p34_p0 = scmp.eq.s32.totalorder %s799_s12, 0 }
  0x12   : > { %621 = dma.hbm_to_vmem [thread:$0]  (!%p619_p10), %s109_s19, 2048, %s111_s22, [#allocation6], %s802_s24, %s802_s24, %s803_s25  }
  0x13   : > { %s884_s28 = scalar_select %p24_p12, %s795_s11, %s26_s27  }
  0x14   : > { %p888_p3 = por %p84_p2, %p33_p13  ;;  %p631_p5 = scmp.lt.s32.totalorder %s799_s12, 2 }
  0x15   : > { %s124_s30 = sand.u32 1, %s795_s11   ;;  %s561_s3 = sshll.u32 %s799_s12, 8 }
  0x16   : > { %p35_p7 = por %p34_p0, %p33_p13  ;;  %s550_s4 = sshll.u32 %s124_s30, 8 }
  0x17   : > { %s133_s7 = scalar_lea.hbm %s1038_s0, %s561_s3  ;;  %s128_s14 = scalar_lea.vmem [#allocation2], %s550_s4 }
  0x18   : > { %s134_s8 = sshll.u32 %s133_s7, 4  ;;  %s136_s17 = sshll.u32 %s128_s14, 4  ;;  %s135_s8 = int_to_ptr.hbm [resolvable:$true] %s134_s8  ;;  %s137_s17 = int_to_ptr.vmem [resolvable:$true] %s136_s17 }
  0x19   : > { %p898_p9 = pnand %p631_p5, %p35_p7  ;;  %s125_s19 = scalar_lea.sflag [#allocation3], %s124_s30 }
  0x1a   : > { %s699_s21 = sshra.s32 %s135_s8, 4  ;;  %s706_s3 = scalar_lea.hbm %s1038_s0, 512  ;;  %s700_s21 = int_to_ptr.hbm [resolvable:$true] %s699_s21 }
  0x1b   : > { %s701_s22 = scalar_lea.hbm %s700_s21, 256  ;;  %p703_p10 = pneg %p898_p9 }
  0x1c   : > { %p702_p2 = scmp.ne.s32.totalorder %s700_s21, %s701_s22  ;;  %p707_p0 = scmp.lt.s32.totalorder %s700_s21, %s1038_s0 }
  0x1d   : > { %p708_p5 = scmp.lt.s32.totalorder %s706_s3, %s701_s22 }
  0x1e   : > { %p704_p12 = pnand %p703_p10, %p702_p2 }
  0x1f   : > { %p709_p7 = por %p708_p5, %p707_p0 }
  0x20   : > { %p705_p13 = pneg %p704_p12 }
  0x22   : > { %p710_p11 = pnand %p709_p7, %p705_p13 }
  0x24   : > { %713 = shalt.err (!%p710_p11)
}
  0x25   : > { %625 = dma.hbm_to_vmem [thread:$0]  (!%p898_p9), %s135_s8, 4096, %s137_s17, %s125_s19, %s802_s24, %s802_s24, %s803_s25  }
  0x26   : > { %148 = sbr.rel (%p862_p8) target bundleno = 327 (0x147), region = 28  ;;  %s918_s30 = sand.u32 (!%p862_p8), 1, %s791_s10  }
  0x27   : > { %s554_s6 = sshll.u32 (!%p862_p8), %s918_s30, 8  ;;  %s151_s7 = scalar_lea.sflag (!%p862_p8), [#allocation3], %s918_s30 }
  0x28   : > { %s922_s14 = scalar_lea.vmem (!%p862_p8), [#allocation2], %s554_s6 }
  0x2b   : > { %774 = dma.done.wait (%p849_p4), %s151_s7, 4096  }
  0x2c   : > { %776 = vsyncadd (%p849_p4), %s151_s7, 4294963200 }
  0x2d   : > { %778 = dma.done.wait (%p40_p1), [#allocation6], 2048  }
  0x2e   : > { %780 = vsyncadd (%p40_p1), [#allocation6], 4294965248  ;;  %v228_v0 = vld [vmem:[#allocation5 + $0x78] sm:$0xff]  ;;  %v227_v1 = vld [vmem:[#allocation5 + $0x70] sm:$0xff]  ;;  %s556_s15 = sshll.u32 %s918_s30, 1  ;;  %s558_s20 = sshll.u32 %s840_s13, 1 }
  0x2f   : > { %229 = vmatpush.msra.mxu0 %v228_v0  ;;  %562 = vmatpush.msra.mxu1 %v228_v0  ;;  %v226_v2 = vld [vmem:[#allocation5 + $0x68] sm:$0xff]  ;;  %v225_v3 = vld [vmem:[#allocation5 + $0x60] sm:$0xff]  ;;  %v224_v4 = vld [vmem:[#allocation5 + $0x58] sm:$0xff]  ;;  %s461_s8 = scalar_lea.hbm %s1040_s2, %s558_s20  ;;  %s180_s17 = scalar_lea.vmem [#allocation7], %s556_s15 }
  0x30   : > { %563 = vmatpush.msra.mxu2 %v228_v0  ;;  %564 = vmatpush.msra.mxu3 %v228_v0  ;;  %v223_v5 = vld [vmem:[#allocation5 + $0x50] sm:$0xff]  ;;  %v222_v6 = vld [vmem:[#allocation5 + $0x48] sm:$0xff]  ;;  %v221_v7 = vld [vmem:[#allocation5 + $0x40] sm:$0xff]  ;;  %s463_s18 = sshll.u32 %s180_s17, 4  ;;  %s465_s19 = sshll.u32 %s461_s8, 4  ;;  %s464_s18 = int_to_ptr.vmem [resolvable:$true] %s463_s18  ;;  %s466_s19 = int_to_ptr.hbm [resolvable:$true] %s465_s19 }
  0x31   : > { %230 = vmatpush.msra.mxu0 %v227_v1  ;;  %565 = vmatpush.msra.mxu1 %v227_v1  ;;  %v220_v8 = vld [vmem:[#allocation5 + $0x38] sm:$0xff]  ;;  %v219_v9 = vld [vmem:[#allocation5 + $0x30] sm:$0xff]  ;;  %v218_v10 = vld [vmem:[#allocation5 + $0x28] sm:$0xff]  ;;  %s451_s13 = scalar_lea.sflag [#allocation4], %s918_s30  ;;  %s743_s21 = sshra.s32 %s466_s19, 4  ;;  %s744_s21 = int_to_ptr.hbm [resolvable:$true] %s743_s21 }
  0x32   : > { %566 = vmatpush.msra.mxu2 %v227_v1  ;;  %567 = vmatpush.msra.mxu3 %v227_v1  ;;  %v217_v11 = vld [vmem:[#allocation5 + $0x20] sm:$0xff]  ;;  %v216_v12 = vld [vmem:[#allocation5 + $0x18] sm:$0xff]  ;;  %v215_v13 = vld [vmem:[#allocation5 + $0x10] sm:$0xff]  ;;  %s745_s22 = scalar_lea.hbm %s744_s21, 2  ;;  %s749_s3 = scalar_lea.hbm %s1040_s2, 4 }
  0x33   : > { %231 = vmatpush.msra.mxu0 %v226_v2  ;;  %568 = vmatpush.msra.mxu1 %v226_v2  ;;  %v214_v14 = vld [vmem:[#allocation5 + $0x8] sm:$0xff]  ;;  %v213_v15 = vld [vmem:[#allocation5] sm:$0xff]  ;;  %v183_v23 = vld [vmem:[%s922_s14 + $0x10] sm:$0xff]  ;;  %p746_p1 = scmp.ne.s32.totalorder %s744_s21, %s745_s22  ;;  %p750_p11 = scmp.lt.s32.totalorder %s744_s21, %s1040_s2 }
  0x34   : > { %569 = vmatpush.msra.mxu2 %v226_v2  ;;  %570 = vmatpush.msra.mxu3 %v226_v2  ;;  %v181_v16 = vld [vmem:[%s922_s14] sm:$0xff]  ;;  %v182_v19 = vld [vmem:[%s922_s14 + $0x8] sm:$0xff]  ;;  %v191_v24 = vld [vmem:[%s922_s14 + $0x50] sm:$0xff]  ;;  %p751_p9 = scmp.lt.s32.totalorder %s749_s3, %s745_s22 }
  0x35   : > { %232 = vmatpush.msra.mxu0 %v225_v3  ;;  %571 = vmatpush.msra.mxu1 %v225_v3  ;;  %v189_v17 = vld [vmem:[%s922_s14 + $0x40] sm:$0xff]  ;;  %v190_v20 = vld [vmem:[%s922_s14 + $0x48] sm:$0xff]  ;;  %v199_v25 = vld [vmem:[%s922_s14 + $0x90] sm:$0xff]  ;;  %p747_p4 = pnand %p746_p1, %p888_p3 }
  0x36   : > { %572 = vmatpush.msra.mxu2 %v225_v3  ;;  %573 = vmatpush.msra.mxu3 %v225_v3  ;;  %v197_v18 = vld [vmem:[%s922_s14 + $0x80] sm:$0xff]  ;;  %v198_v21 = vld [vmem:[%s922_s14 + $0x88] sm:$0xff]  ;;  %v184_v27 = vld [vmem:[%s922_s14 + $0x18] sm:$0xff]  ;;  %p752_p2 = por %p751_p9, %p750_p11 }
  0x37   : > { %233 = vmatpush.msra.mxu0 %v224_v4  ;;  %574 = vmatpush.msra.mxu1 %v224_v4  ;;  %v205_v22 = vld [vmem:[%s922_s14 + $0xc0] sm:$0xff]  ;;  %v206_v26 = vld [vmem:[%s922_s14 + $0xc8] sm:$0xff]  ;;  %v192_v28 = vld [vmem:[%s922_s14 + $0x58] sm:$0xff]  ;;  %p748_p8 = pneg %p747_p4 }
  0x38   : > { %575 = vmatpush.msra.mxu2 %v224_v4  ;;  %576 = vmatpush.msra.mxu3 %v224_v4  ;;  %v200_v29 = vld [vmem:[%s922_s14 + $0x98] sm:$0xff]  ;;  %v207_v30 = vld [vmem:[%s922_s14 + $0xd0] sm:$0xff]  ;;  %v185_v31 = vld [vmem:[%s922_s14 + $0x20] sm:$0xff] }
  0x39   : > { %234 = vmatpush.msra.mxu0 %v223_v5  ;;  %577 = vmatpush.msra.mxu1 %v223_v5  ;;  %v193_v32 = vld [vmem:[%s922_s14 + $0x60] sm:$0xff]  ;;  %v208_v33 = vld [vmem:[%s922_s14 + $0xd8] sm:$0xff]  ;;  %v186_v35 = vld [vmem:[%s922_s14 + $0x28] sm:$0xff]  ;;  %p753_p10 = pnand %p752_p2, %p748_p8 }
  0x3a   : > { %578 = vmatpush.msra.mxu2 %v223_v5  ;;  %579 = vmatpush.msra.mxu3 %v223_v5  ;;  %v201_v34 = vld [vmem:[%s922_s14 + $0xa0] sm:$0xff]  ;;  %v194_v36 = vld [vmem:[%s922_s14 + $0x68] sm:$0xff]  ;;  %v187_v39 = vld [vmem:[%s922_s14 + $0x30] sm:$0xff] }
  0x3b   : > { %235 = vmatpush.msra.mxu0 %v222_v6  ;;  %580 = vmatpush.msra.mxu1 %v222_v6  ;;  %v209_v37 = vld [vmem:[%s922_s14 + $0xe0] sm:$0xff]  ;;  %v202_v38 = vld [vmem:[%s922_s14 + $0xa8] sm:$0xff]  ;;  %v195_v40 = vld [vmem:[%s922_s14 + $0x70] sm:$0xff] }
  0x3c   : > { %581 = vmatpush.msra.mxu2 %v222_v6  ;;  %582 = vmatpush.msra.mxu3 %v222_v6  ;;  %v210_v41 = vld [vmem:[%s922_s14 + $0xe8] sm:$0xff]  ;;  %v203_v42 = vld [vmem:[%s922_s14 + $0xb0] sm:$0xff]  ;;  %v188_v43 = vld [vmem:[%s922_s14 + $0x38] sm:$0xff] }
  0x3d   : > { %236 = vmatpush.msra.mxu0 %v221_v7  ;;  %583 = vmatpush.msra.mxu1 %v221_v7  ;;  %v196_v44 = vld [vmem:[%s922_s14 + $0x78] sm:$0xff]  ;;  %v211_v45 = vld [vmem:[%s922_s14 + $0xf0] sm:$0xff] }
  0x3e   : > { %584 = vmatpush.msra.mxu2 %v221_v7  ;;  %585 = vmatpush.msra.mxu3 %v221_v7  ;;  %v204_v46 = vld [vmem:[%s922_s14 + $0xb8] sm:$0xff] }
  0x3f   : > { %237 = vmatpush.msra.mxu0 %v220_v8  ;;  %586 = vmatpush.msra.mxu1 %v220_v8  ;;  %v212_v47 = vld [vmem:[%s922_s14 + $0xf8] sm:$0xff] }
  0x40   : > { %587 = vmatpush.msra.mxu2 %v220_v8  ;;  %588 = vmatpush.msra.mxu3 %v220_v8 }
  0x41   : > { %238 = vmatpush.msra.mxu0 %v219_v9  ;;  %589 = vmatpush.msra.mxu1 %v219_v9 }
  0x42   : > { %590 = vmatpush.msra.mxu2 %v219_v9  ;;  %591 = vmatpush.msra.mxu3 %v219_v9 }
  0x43   : > { %239 = vmatpush.msra.mxu0 %v218_v10  ;;  %592 = vmatpush.msra.mxu1 %v218_v10 }
  0x44   : > { %593 = vmatpush.msra.mxu2 %v218_v10  ;;  %594 = vmatpush.msra.mxu3 %v218_v10 }
  0x45   : > { %240 = vmatpush.msra.mxu0 %v217_v11  ;;  %595 = vmatpush.msra.mxu1 %v217_v11 }
  0x46   : > { %596 = vmatpush.msra.mxu2 %v217_v11  ;;  %597 = vmatpush.msra.mxu3 %v217_v11 }
  0x47   : > { %241 = vmatpush.msra.mxu0 %v216_v12  ;;  %598 = vmatpush.msra.mxu1 %v216_v12 }
  0x48   : > { %599 = vmatpush.msra.mxu2 %v216_v12  ;;  %600 = vmatpush.msra.mxu3 %v216_v12 }
  0x49   : > { %242 = vmatpush.msra.mxu0 %v215_v13  ;;  %601 = vmatpush.msra.mxu1 %v215_v13 }
  0x4a   : > { %602 = vmatpush.msra.mxu2 %v215_v13  ;;  %603 = vmatpush.msra.mxu3 %v215_v13 }
  0x4b   : > { %243 = vmatpush.msra.mxu0 %v214_v14  ;;  %604 = vmatpush.msra.mxu1 %v214_v14 }
  0x4c   : > { %605 = vmatpush.msra.mxu2 %v214_v14  ;;  %606 = vmatpush.msra.mxu3 %v214_v14 }
  0x4d   : > { %244 = vmatpush.msra.mxu0 %v213_v15  ;;  %607 = vmatpush.msra.mxu1 %v213_v15 }
  0x4e   : > { %245 = vmatmul.f32.vlgmr.msra.gmra.mxu0 %v181_v16  ;;  %269 = vmatmul.f32.vlgmr.msra.gmra.mxu1 %v189_v17 }
  0x4f   : > { %608 = vmatpush.msra.mxu2 %v213_v15  ;;  %609 = vmatpush.msra.mxu3 %v213_v15 }
  0x50   : > { %293 = vmatmul.f32.vlgmr.msra.gmra.mxu2 %v197_v18  ;;  %317 = vmatmul.f32.vlgmr.msra.gmra.mxu3 %v205_v22 }
  0x56   : > { %248 = vmatmul.f32.gmra.mxu0 %v182_v19  ;;  %272 = vmatmul.f32.gmra.mxu1 %v190_v20 }
  0x58   : > { %296 = vmatmul.f32.gmra.mxu2 %v198_v21  ;;  %320 = vmatmul.f32.gmra.mxu3 %v206_v26 }
  0x5e   : > { %251 = vmatmul.f32.gmra.mxu0 %v183_v23  ;;  %275 = vmatmul.f32.gmra.mxu1 %v191_v24 }
  0x60   : > { %299 = vmatmul.f32.gmra.mxu2 %v199_v25  ;;  %323 = vmatmul.f32.gmra.mxu3 %v207_v30 }
  0x66   : > { %254 = vmatmul.f32.gmra.mxu0 %v184_v27  ;;  %278 = vmatmul.f32.gmra.mxu1 %v192_v28 }
  0x68   : > { %302 = vmatmul.f32.gmra.mxu2 %v200_v29  ;;  %326 = vmatmul.f32.gmra.mxu3 %v208_v33 }
  0x6e   : > { %257 = vmatmul.f32.gmra.mxu0 %v185_v31  ;;  %281 = vmatmul.f32.gmra.mxu1 %v193_v32 }
  0x70   : > { %305 = vmatmul.f32.gmra.mxu2 %v201_v34  ;;  %329 = vmatmul.f32.gmra.mxu3 %v209_v37 }
  0x76   : > { %260 = vmatmul.f32.gmra.mxu0 %v186_v35  ;;  %284 = vmatmul.f32.gmra.mxu1 %v194_v36 }
  0x78   : > { %308 = vmatmul.f32.gmra.mxu2 %v202_v38  ;;  %332 = vmatmul.f32.gmra.mxu3 %v210_v41 }
  0x7e   : > { %263 = vmatmul.f32.gmra.mxu0 %v187_v39  ;;  %287 = vmatmul.f32.gmra.mxu1 %v195_v40 }
  0x80   : > { %311 = vmatmul.f32.gmra.mxu2 %v203_v42  ;;  %335 = vmatmul.f32.gmra.mxu3 %v211_v45 }
  0x86   : > { %266 = vmatmul.f32.gmra.mxu0 %v188_v43  ;;  %290 = vmatmul.f32.gmra.mxu1 %v196_v44 }
  0x88   : > { %314 = vmatmul.f32.gmra.mxu2 %v204_v46  ;;  %338 = vmatmul.f32.gmra.mxu3 %v212_v47 }
  0xcb   : > { %v246_v48 = vpop.f32.mrf.mxu0  ;;  %v270_v49 = vpop.f32.mrf.mxu1 }
  0xcc   : > { %v379_v2 = vmul.f32 %v246_v48, %v246_v48  ;;  %v387_v28 = vmul.f32 %v270_v49, %v270_v49 }
  0xd3   : > { %v249_v50 = vpop.f32.mrf.mxu0  ;;  %v273_v51 = vpop.f32.mrf.mxu1 }
  0xd4   : > { %v964_v52 = vpop.f32.mrf.mxu2  ;;  %v968_v58 = vpop.f32.mrf.mxu3  ;;  %v380_v0 = vmul.f32 %v249_v50, %v249_v50  ;;  %v342_v3 = vadd.f32 %v249_v50, %v246_v48  ;;  %v388_v32 = vmul.f32 %v273_v51, %v273_v51 }
  0xd6   : > { %v411_v5 = vadd.f32 %v380_v0, %v379_v2  ;;  %v395_v0 = vmul.f32 %v964_v52, %v964_v52 }
  0xdb   : > { %v252_v53 = vpop.f32.mrf.mxu0  ;;  %v276_v54 = vpop.f32.mrf.mxu1 }
  0xdc   : > { %v966_v56 = vpop.f32.mrf.mxu2  ;;  %v972_v63 = vpop.f32.mrf.mxu3  ;;  %v381_v4 = vmul.f32 %v252_v53, %v252_v53  ;;  %v343_v6 = vadd.f32 %v342_v3, %v252_v53  ;;  %v389_v35 = vmul.f32 %v276_v54, %v276_v54 }
  0xde   : > { %v412_v10 = vadd.f32 %v411_v5, %v381_v4 }
  0xe3   : > { %v255_v55 = vpop.f32.mrf.mxu0  ;;  %v279_v57 = vpop.f32.mrf.mxu1 }
  0xe4   : > { %v970_v60 = vpop.f32.mrf.mxu2  ;;  %v382_v7 = vmul.f32 %v255_v55, %v255_v55  ;;  %v344_v11 = vadd.f32 %v343_v6, %v255_v55  ;;  %v976_v13 = vpop.f32.mrf.mxu3  ;;  %v390_v39 = vmul.f32 %v279_v57, %v279_v57 }
  0xe5   : > { %v397_v5 = vmul.f32 %v970_v60, %v970_v60 }
  0xe6   : > { %v413_v14 = vadd.f32 %v412_v10, %v382_v7 }
  0xeb   : > { %v258_v59 = vpop.f32.mrf.mxu0  ;;  %v282_v61 = vpop.f32.mrf.mxu1 }
  0xec   : > { %v974_v1 = vpop.f32.mrf.mxu2  ;;  %v383_v12 = vmul.f32 %v258_v59, %v258_v59  ;;  %v345_v15 = vadd.f32 %v344_v11, %v258_v59  ;;  %v978_v31 = vpop.f32.mrf.mxu3  ;;  %v391_v42 = vmul.f32 %v282_v61, %v282_v61 }
  0xee   : > { %v414_v17 = vadd.f32 %v413_v14, %v383_v12 }
  0xf3   : > { %v261_v62 = vpop.f32.mrf.mxu0  ;;  %v285_v9 = vpop.f32.mrf.mxu1 }
  0xf4   : > { %v384_v16 = vmul.f32 %v261_v62, %v261_v62  ;;  %v346_v18 = vadd.f32 %v345_v15, %v261_v62  ;;  %v306_v20 = vpop.f32.mrf.mxu2  ;;  %v392_v47 = vmul.f32 %v285_v9, %v285_v9 }
  0xf5   : > { %v399_v11 = vmul.f32 %v306_v20, %v306_v20 }
  0xf6   : > { %v415_v21 = vadd.f32 %v414_v17, %v384_v16 }
  0xfb   : > { %v264_v8 = vpop.f32.mrf.mxu0  ;;  %v288_v27 = vpop.f32.mrf.mxu1 }
  0xfc   : > { %v385_v19 = vmul.f32 %v264_v8, %v264_v8  ;;  %v347_v22 = vadd.f32 %v346_v18, %v264_v8  ;;  %v309_v38 = vpop.f32.mrf.mxu2  ;;  %v393_v55 = vmul.f32 %v288_v27, %v288_v27 }
  0xfe   : > { %v416_v24 = vadd.f32 %v415_v21, %v385_v19 }
 0x103   : > { %v267_v23 = vpop.f32.mrf.mxu0  ;;  %v291_v45 = vpop.f32.mrf.mxu1 }
 0x104   : > { %v348_v25 = vadd.f32 %v347_v22, %v267_v23  ;;  %v386_v26 = vmul.f32 %v267_v23, %v267_v23 }
 0x106   : > { %v349_v29 = vadd.f32 %v348_v25, %v270_v49  ;;  %v417_v30 = vadd.f32 %v416_v24, %v386_v26  ;;  %v330_v49 = vpop.f32.mrf.mxu3  ;;  %v403_v25 = vmul.f32 %v968_v58, %v968_v58 }
 0x108   : > { %v350_v33 = vadd.f32 %v349_v29, %v273_v51  ;;  %v418_v34 = vadd.f32 %v417_v30, %v387_v28  ;;  %v394_v51 = vmul.f32 %v291_v45, %v291_v45  ;;  %v405_v29 = vmul.f32 %v976_v13, %v976_v13 }
 0x10a   : > { %v351_v36 = vadd.f32 %v350_v33, %v276_v54  ;;  %v419_v37 = vadd.f32 %v418_v34, %v388_v32  ;;  %v312_v54 = vpop.f32.mrf.mxu2  ;;  %v406_v33 = vmul.f32 %v978_v31, %v978_v31 }
 0x10b   : > { %v401_v21 = vmul.f32 %v312_v54, %v312_v54 }
 0x10c   : > { %v420_v40 = vadd.f32 %v419_v37, %v389_v35  ;;  %v352_v41 = vadd.f32 %v351_v36, %v279_v57 }
 0x10e   : > { %v353_v43 = vadd.f32 %v352_v41, %v282_v61  ;;  %v421_v44 = vadd.f32 %v420_v40, %v390_v39  ;;  %v396_v61 = vmul.f32 %v966_v56, %v966_v56  ;;  %v333_v8 = vpop.f32.mrf.mxu3 }
 0x10f   : > { %v408_v39 = vmul.f32 %v333_v8, %v333_v8 }
 0x110   : > { %v354_v46 = vadd.f32 %v353_v43, %v285_v9  ;;  %v422_v48 = vadd.f32 %v421_v44, %v391_v42  ;;  %v398_v9 = vmul.f32 %v974_v1, %v974_v1 }
 0x112   : > { %v423_v50 = vadd.f32 %v422_v48, %v392_v47  ;;  %v355_v53 = vadd.f32 %v354_v46, %v288_v27  ;;  %v315_v15 = vpop.f32.mrf.mxu2 }
 0x113   : > { %v402_v22 = vmul.f32 %v315_v15, %v315_v15 }
 0x114   : > { %v424_v59 = vadd.f32 %v423_v50, %v393_v55  ;;  %v356_v62 = vadd.f32 %v355_v53, %v291_v45 }
 0x116   : > { %v357_v57 = vadd.f32 %v356_v62, %v964_v52  ;;  %v425_v2 = vadd.f32 %v424_v59, %v394_v51  ;;  %v336_v24 = vpop.f32.mrf.mxu3 }
 0x117   : > { %v409_v43 = vmul.f32 %v336_v24, %v336_v24 }
 0x118   : > { %v358_v3 = vadd.f32 %v357_v57, %v966_v56  ;;  %v426_v4 = vadd.f32 %v425_v2, %v395_v0  ;;  %v400_v56 = vmul.f32 %v309_v38, %v309_v38 }
 0x11a   : > { %v359_v6 = vadd.f32 %v358_v3, %v970_v60  ;;  %v427_v7 = vadd.f32 %v426_v4, %v396_v61 }
 0x11c   : > { %v428_v10 = vadd.f32 %v427_v7, %v397_v5  ;;  %v360_v52 = vadd.f32 %v359_v6, %v974_v1 }
 0x11e   : > { %v361_v12 = vadd.f32 %v360_v52, %v306_v20  ;;  %v429_v14 = vadd.f32 %v428_v10, %v398_v9  ;;  %v404_v20 = vmul.f32 %v972_v63, %v972_v63 }
 0x120   : > { %v362_v16 = vadd.f32 %v361_v12, %v309_v38  ;;  %v430_v17 = vadd.f32 %v429_v14, %v399_v11  ;;  %v339_v38 = vpop.f32.mrf.mxu3 }
 0x122   : > { %v431_v18 = vadd.f32 %v430_v17, %v400_v56  ;;  %v363_v19 = vadd.f32 %v362_v16, %v312_v54 }
 0x124   : > { %v432_v60 = vadd.f32 %v431_v18, %v401_v21  ;;  %v364_v23 = vadd.f32 %v363_v19, %v315_v15 }
 0x126   : > { %v365_v26 = vadd.f32 %v364_v23, %v968_v58  ;;  %v433_v1 = vadd.f32 %v432_v60, %v402_v22  ;;  %v407_v58 = vmul.f32 %v330_v49, %v330_v49 }
 0x128   : > { %v366_v27 = vadd.f32 %v365_v26, %v972_v63  ;;  %v434_v28 = vadd.f32 %v433_v1, %v403_v25 }
 0x12a   : > { %v367_v30 = vadd.f32 %v366_v27, %v976_v13  ;;  %v435_v32 = vadd.f32 %v434_v28, %v404_v20  ;;  %v410_v13 = vmul.f32 %v339_v38, %v339_v38 }
 0x12c   : > { %v436_v34 = vadd.f32 %v435_v32, %v405_v29  ;;  %v368_v35 = vadd.f32 %v367_v30, %v978_v31 }
 0x12e   : > { %v369_v36 = vadd.f32 %v368_v35, %v330_v49  ;;  %v437_v37 = vadd.f32 %v436_v34, %v406_v33 }
 0x130   : > { %v370_v63 = vadd.f32 %v369_v36, %v333_v8  ;;  %v438_v40 = vadd.f32 %v437_v37, %v407_v58 }
 0x132   : > { %v439_v41 = vadd.f32 %v438_v40, %v408_v39  ;;  %v371_v42 = vadd.f32 %v370_v63, %v336_v24 }
 0x134   : > { %v440_v44 = vadd.f32 %v439_v41, %v409_v43  ;;  %v372_v45 = vadd.f32 %v371_v42, %v339_v38 }
 0x136   : > { %v373_v46 = vrot.slane %v372_v45, 4  ;;  %v441_v47 = vadd.f32 %v440_v44, %v410_v13 }
 0x138   : > { %v374_v48 = vadd.f32 %v373_v46, %v372_v45  ;;  %v442_v50 = vrot.slane %v441_v47, 4 }
 0x13a   : > { %v375_v31 = vrot.slane %v374_v48, 2  ;;  %v443_v49 = vadd.f32 %v442_v50, %v441_v47 }
 0x13c   : > { %v376_v53 = vadd.f32 %v375_v31, %v374_v48  ;;  %v444_v55 = vrot.slane %v443_v49, 2 }
 0x13e   : > { %v377_v51 = vrot.slane %v376_v53, 1  ;;  %v445_v59 = vadd.f32 %v444_v55, %v443_v49 }
 0x140   : > { %v378_v62 = vadd.f32 %v377_v51, %v376_v53  ;;  %v446_v54 = vrot.slane %v445_v59, 1 }
 0x142   : > { %v447_v0 = vadd.f32 %v446_v54, %v445_v59  ;;  %448 = vst [vmem:[%s180_s17] sm:$0x1] %v378_v62 }
 0x144   : > { %449 = vst [vmem:[%s180_s17 + $0x1] sm:$0x1] %v447_v0 }
 0x145   : > { %756 = shalt.err (!%p753_p10)
}
 0x146   : > { %616 = dma.vmem_to_hbm [thread:$0]  (%p888_p3), %s464_s18, 32, %s466_s19, %s451_s13  }
 0x147 PF: > { %s477_s30 = sand.u32 1, %s787_s9   ;;  %p1046_p12 = scmp.ge.s32.totalorder %s799_s12, 2 }
 0x148   : > { %s478_s6 = scalar_lea.sflag [#allocation4], %s477_s30 }
 0x149   : > { %p627_p13 = pnand %p1046_p12, %p854_p6 }
 0x14b   : > { %p628_p0 = pneg %p627_p13 }
 0x14d   : > { %782 = dma.done.wait (%p628_p0), %s478_s6, 32  }
 0x14e   : > { %784 = vsyncadd (%p628_p0), %s478_s6, 4294967264  ;;  %p16_p5 = scmp.ge.s32.totalorder %s872_s23, 4   ;;  %s1047_s9 = smov %s791_s10 }
 0x14f   : > { %s1048_s10 = smov %s795_s11  ;;  %s1049_s11 = smov %s884_s28 }
 0x150   : > { %s1050_s12 = smov %s872_s23  ;;  %18 = sbr.rel (!%p16_p5) target bundleno = 6 (0x6), region = 77 }
 0x155   :  { %484 = vsyncpa [#allocation3], 1 }
 0x156   :  { %486 = vsyncpa [#allocation3 + $0x1], 1 }
 0x157   :  { %487 = vsyncpa [#allocation6], 1 }
 0x158   :  { %488 = vsyncpa [#allocation4], 1 }
 0x159   :  { %490 = vsyncpa [#allocation4 + $0x1], 1 }

</bundles_post_ra>
